<compile_context>
chip_gen: v6e
topology: v6e:2x2x1
jax: 0.10.0
libtpu: 0.0.40
codegen_flags: <defaults>
</compile_context>

<pallas_src>
import jax
import jax.numpy as jnp
from jax.experimental import pallas as pl
from jax.experimental.pallas import tpu as pltpu


def _neg_logsumexp_kernel(n1_ref, n2_ref, out_ref):
    """Per-row: max1 + max2 + log(den1 * den2), for a (tile_b, N) block pair."""
    n1 = n1_ref[...].astype(jnp.float32)               # (tile_b, N)
    n2 = n2_ref[...].astype(jnp.float32)               # (tile_b, N)

    m1 = jnp.max(n1, axis=1, keepdims=True)            # (tile_b, 1)
    m2 = jnp.max(n2, axis=1, keepdims=True)            # (tile_b, 1)

    d1 = jnp.sum(jnp.exp(n1 - m1), axis=1, keepdims=True)   # (tile_b, 1)
    d2 = jnp.sum(jnp.exp(n2 - m2), axis=1, keepdims=True)   # (tile_b, 1)

    # max1 + max2 + log(d1) + log(d2), with the two logs fused into one.
    out_ref[...] = m1 + m2 + jnp.log(d1 * d2)           # (tile_b, 1) f32


def _choose_tile_b(B, N, itemsize, vmem_input_budget_bytes=16 * 1024 * 1024):
    """Largest batch tile (multiple of 8, dividing B) whose double-buffered
    negative-input footprint (2 inputs x 2 buffers) fits the budget.

    The 16 MiB budget leaves ample headroom under v7x's 64 MiB physical /
    32 MiB scoped VMEM (and trivially fits v5e / v6e's 128 MiB).
    """
    per_row_bytes = 2 * 2 * N * itemsize                 # 2 inputs x 2 buffers
    tile = max(8, min(B, vmem_input_budget_bytes // per_row_bytes))
    tile = (tile // 8) * 8
    if tile <= 0:
        tile = min(B, 8)
    # Shrink (in multiples of 8) until it divides B.
    while tile > 8 and B % tile != 0:
        tile -= 8
    if B % tile != 0:
        # Fall back to a single full-batch block (block == full array dims).
        tile = B
    return tile


def softmax_loss(positive, negative_1, negative_2, *, tile_b=None):
    """Returns -losses.mean(), matching the PyTorch module's forward pass."""
    B, N = negative_1.shape
    assert positive.shape == (B, 1)
    assert negative_2.shape == (B, N)

    itemsize = jnp.dtype(negative_1.dtype).itemsize
    if tile_b is None:
        tile_b = _choose_tile_b(B, N, itemsize)
    assert B % tile_b == 0, "tile_b must divide batch"
    num_tiles = B // tile_b

    bytes_accessed = 2 * B * N * itemsize + B * 4        # two reads + f32 output
    cost = pl.CostEstimate(
        flops=6 * B * N,                                  # max + sub + sum per elem, 2 arrays
        transcendentals=2 * B * N,                        # exps (+ a few logs)
        bytes_accessed=bytes_accessed,
    )

    # Per-row term: max1 + max2 + log(d1*d2), shape (B, 1) f32.
    # NOTE: pipeline_mode=pl.Buffered(3) on the negative inputs is a possible
    # further tweak if profiling shows exposed DMA; skipped here (2 buffers fit).
    neg_term = pl.pallas_call(
        _neg_logsumexp_kernel,
        out_shape=jax.ShapeDtypeStruct((B, 1), jnp.float32),
        grid_spec=pltpu.PrefetchScalarGridSpec(
            num_scalar_prefetch=0,
            grid=(num_tiles,),
            in_specs=[
                pl.BlockSpec((tile_b, N), lambda i: (i, 0)),
                pl.BlockSpec((tile_b, N), lambda i: (i, 0)),
            ],
            out_specs=pl.BlockSpec((tile_b, 1), lambda i: (i, 0)),
        ),
        compiler_params=pltpu.CompilerParams(
            dimension_semantics=("parallel",),            # independent per-tile work
            vmem_limit_bytes=32 * 1024 * 1024,            # explicit, v7x-safe
        ),
        cost_estimate=cost,
    )(negative_1, negative_2)

    # Glue (trivial O(B) work): -mean(2*positive - neg_term)
    #   = mean(neg_term) - 2*mean(positive)
    pos_mean = jnp.mean(positive.astype(jnp.float32))
    return jnp.mean(neg_term) - 2.0 * pos_mean


def _reference(positive, negative_1, negative_2):
    n1 = negative_1.astype(jnp.float32)
    n2 = negative_2.astype(jnp.float32)
    p = positive.astype(jnp.float32)
    m1 = jnp.max(n1, axis=1, keepdims=True)
    m2 = jnp.max(n2, axis=1, keepdims=True)
    d1 = jnp.sum(jnp.exp(n1 - m1), axis=-1, keepdims=True)
    d2 = jnp.sum(jnp.exp(n2 - m2), axis=-1, keepdims=True)
    losses = 2 * p - m1 - m2 - jnp.log(d1) - jnp.log(d2)
    return -jnp.mean(losses)


if __name__ == "__main__":
    key = jax.random.PRNGKey(0)
    k1, k2, k3 = jax.random.split(key, 3)

    B, N = 16, 128  # small shapes: batch of 16 positive triples, 128 negatives each
    positive = jax.random.normal(k1, (B, 1), dtype=jnp.float32)
    negative_1 = jax.random.normal(k2, (B, N), dtype=jnp.float32)
    negative_2 = jax.random.normal(k3, (B, N), dtype=jnp.float32)

    out = softmax_loss(positive, negative_1, negative_2)
    out = jax.block_until_ready(out)

    ref = _reference(positive, negative_1, negative_2)
    assert jnp.allclose(out, ref, rtol=1e-5, atol=1e-5), (out, ref)

    # Also exercise the bf16 streaming path (cast happens inside the kernel).
    out_bf16 = jax.block_until_ready(
        softmax_loss(positive,
                     negative_1.astype(jnp.bfloat16),
                     negative_2.astype(jnp.bfloat16)))
    ref_bf16 = _reference(positive,
                          negative_1.astype(jnp.bfloat16),
                          negative_2.astype(jnp.bfloat16))
    assert jnp.allclose(out_bf16, ref_bf16, rtol=1e-2, atol=1e-2), (out_bf16, ref_bf16)

    print("KERNEL_OK")
</pallas_src>

<mosaic_0001>
module attributes {stable_mosaic.version = 11 : i64} {
  func.func @_neg_logsumexp_kernel(%arg0: i32, %arg1: memref<16x128xf32, #tpu.memory_space<vmem>>, %arg2: memref<16x128xf32, #tpu.memory_space<vmem>>, %arg3: memref<16x1xf32, #tpu.memory_space<vmem>>) attributes {dimension_semantics = [#tpu.dimension_semantics<parallel>], iteration_bounds = array<i64: 1>, scalar_prefetch = 0 : i64, scratch_operands = 0 : i64, tpu.core_type = #tpu.core_type<tc>, window_params = [{transform_indices = @transform_0, window_bounds = array<i64: 16, 128>}, {transform_indices = @transform_1, window_bounds = array<i64: 16, 128>}, {transform_indices = @transform_2, window_bounds = array<i64: 16, 1>}]} {
    %c0 = arith.constant 0 : index
    %c0_0 = arith.constant 0 : index
    %0 = vector.load %arg1[%c0, %c0_0] : memref<16x128xf32, #tpu.memory_space<vmem>>, vector<16x128xf32>
    %c0_1 = arith.constant 0 : index
    %c0_2 = arith.constant 0 : index
    %1 = vector.load %arg2[%c0_1, %c0_2] : memref<16x128xf32, #tpu.memory_space<vmem>>, vector<16x128xf32>
    %cst = arith.constant dense<0xFF800000> : vector<16xf32>
    %2 = vector.multi_reduction <maximumf>, %0, %cst [1] : vector<16x128xf32> to vector<16xf32>
    %3 = vector.shape_cast %2 : vector<16xf32> to vector<16x1xf32>
    %cst_3 = arith.constant dense<0xFF800000> : vector<16xf32>
    %4 = vector.multi_reduction <maximumf>, %1, %cst_3 [1] : vector<16x128xf32> to vector<16xf32>
    %5 = vector.shape_cast %4 : vector<16xf32> to vector<16x1xf32>
    %6 = vector.broadcast %3 : vector<16x1xf32> to vector<16x128xf32>
    %7 = arith.subf %0, %6 : vector<16x128xf32>
    %8 = math.exp %7 : vector<16x128xf32>
    %cst_4 = arith.constant dense<0.000000e+00> : vector<16xf32>
    %9 = vector.multi_reduction <add>, %8, %cst_4 [1] : vector<16x128xf32> to vector<16xf32>
    %10 = vector.shape_cast %9 : vector<16xf32> to vector<16x1xf32>
    %11 = vector.broadcast %5 : vector<16x1xf32> to vector<16x128xf32>
    %12 = arith.subf %1, %11 : vector<16x128xf32>
    %13 = math.exp %12 : vector<16x128xf32>
    %cst_5 = arith.constant dense<0.000000e+00> : vector<16xf32>
    %14 = vector.multi_reduction <add>, %13, %cst_5 [1] : vector<16x128xf32> to vector<16xf32>
    %15 = vector.shape_cast %14 : vector<16xf32> to vector<16x1xf32>
    %16 = arith.addf %3, %5 : vector<16x1xf32>
    %17 = arith.mulf %10, %15 : vector<16x1xf32>
    %18 = math.log %17 : vector<16x1xf32>
    %19 = arith.addf %16, %18 : vector<16x1xf32>
    %c0_6 = arith.constant 0 : index
    %c0_7 = arith.constant 0 : index
    %20 = vector.load %arg3[%c0_6, %c0_7] : memref<16x1xf32, #tpu.memory_space<vmem>>, vector<16x1xf32>
    tpu.vector_store %arg3[%c0_6, %c0_7], %19 {strides = array<i32>} : memref<16x1xf32, #tpu.memory_space<vmem>>, vector<16x1xf32>,
    return
  }
  func.func @transform_0(%arg0: i32) -> (i32, i32) {
    %c0_i32 = arith.constant 0 : i32
    %c0_i32_0 = arith.constant 0 : i32
    return %arg0, %c0_i32 : i32, i32
  }
  func.func @transform_1(%arg0: i32) -> (i32, i32) {
    %c0_i32 = arith.constant 0 : i32
    %c0_i32_0 = arith.constant 0 : i32
    return %arg0, %c0_i32 : i32, i32
  }
  func.func @transform_2(%arg0: i32) -> (i32, i32) {
    %c0_i32 = arith.constant 0 : i32
    %c0_i32_0 = arith.constant 0 : i32
    return %arg0, %c0_i32 : i32, i32
  }
}

</mosaic_0001>

<bundles_post_ra>
// kernel: tpu_custom_call.1
= control target key start
LH: loop header
LB: loop body
LE: loop exit
PB: predicated region body
PF: predicated region fallthrough
CT: control target
= control target key end

     0   :  { %7 = vsyncpa [#allocation3], 0  ;;  %s181_s0 = inlined_call_operand.hbm [shape: f32[16,128], index: 0, kind: input, shape index: {}]   ;;  %s182_s1 = inlined_call_operand.hbm [shape: f32[16,128], index: 1, kind: input, shape index: {}]   ;;  %s183_s2 = inlined_call_operand.vmem [shape: f32[16,1], index: 2, kind: output, shape index: {}]  }
   0x1   :  { %8 = vsyncpa [#allocation5], 0  ;;  %s150_s9 = smov [#allocation2]  }
   0x2   :  { %s14_s10 = sshll.u32 %s150_s9, 4  ;;  %s15_s10 = int_to_ptr.vmem [resolvable:$true] %s14_s10 }
   0x3   :  { %s114_s11 = scalar_lea.vmem %s15_s10, 256  ;;  %p119_p1 = scmp.lt.s32.totalorder %s15_s10, %s15_s10 }
   0x4   :  { %p115_p0 = scmp.ne.s32.totalorder %s15_s10, %s114_s11  ;;  %p120_p2 = scmp.lt.s32.totalorder %s114_s11, %s114_s11 }
   0x6   :  { %p121_p3 = por %p120_p2, %p119_p1 }
   0x8   :  { %p122_p4 = pnand %p121_p3, %p115_p0 }
   0xa   :  { %125 = shalt.err (!%p122_p4)
}
   0xb   :  { %s151_s12 = smov 128   ;;  %s152_s13 = smov 8  }
   0xc   :  { %20 = dma.hbm_to_vmem [thread:$0]  %s181_s0, 256, %s15_s10, [#allocation3], %s151_s12, %s151_s12, %s152_s13  }
   0xd   :  { %s153_s16 = smov [#allocation4]  }
   0xe   :  { %s26_s17 = sshll.u32 %s153_s16, 4  ;;  %s27_s17 = int_to_ptr.vmem [resolvable:$true] %s26_s17 }
   0xf   :  { %s134_s18 = scalar_lea.vmem %s27_s17, 256  ;;  %p139_p6 = scmp.lt.s32.totalorder %s27_s17, %s27_s17 }
  0x10   :  { %p135_p5 = scmp.ne.s32.totalorder %s27_s17, %s134_s18  ;;  %p140_p7 = scmp.lt.s32.totalorder %s134_s18, %s134_s18 }
  0x12   :  { %p141_p8 = por %p140_p7, %p139_p6 }
  0x14   :  { %p142_p9 = pnand %p141_p8, %p135_p5 }
  0x16   :  { %145 = shalt.err (!%p142_p9)
}
  0x17   :  { %32 = dma.hbm_to_vmem [thread:$0]  %s182_s1, 256, %s27_s17, [#allocation5], %s151_s12, %s151_s12, %s152_s13  }
  0x18   :  { %146 = dma.done.wait [#allocation3], 256  }
  0x19   :  { %147 = vsyncadd [#allocation3], 4294967040 }
  0x1a   :  { %148 = dma.done.wait [#allocation5], 256  }
  0x1b   :  { %149 = vsyncadd [#allocation5], 4294967040  ;;  %v41_v0 = vld [vmem:[#allocation4] sm:$0xff]  ;;  %v39_v1 = vld [vmem:[#allocation2] sm:$0xff]  ;;  %vm81_vm0 = vcmask 7168  }
  0x1c   :  { %47 = vmax.xlane.f32.xlu1 %v41_v0  ;;  %43 = vmax.xlane.f32.xlu0 %v39_v1  ;;  %v42_v2 = vld [vmem:[#allocation4 + $0x8] sm:$0xff]  ;;  %v40_v3 = vld [vmem:[#allocation2 + $0x8] sm:$0xff] }
  0x20   :  { %49 = vmax.xlane.f32.xlu1 %v42_v2  ;;  %45 = vmax.xlane.f32.xlu0 %v40_v3 }
  0xa5   :  { %v48_v4 = vpop.xlane.xlu1 %47  ;;  %v44_v5 = vpop.xlane.xlu0 %43 }
  0xa6   :  { %v61_v6 = vsub.f32 %v41_v0, %v48_v4  ;;  %v51_v7 = vsub.f32 %v39_v1, %v44_v5  ;;  %v71_v8 = vadd.f32 %v48_v4, %v44_v5 }
  0xa8   :  { %v53_v9 = vmul.f32 1.442695, %v51_v7  ;;  %v63_v10 = vmul.f32 1.442695, %v61_v6 }
  0xa9   :  { %v50_v11 = vpop.xlane.xlu1 %49  ;;  %v46_v12 = vpop.xlane.xlu0 %45 }
  0xaa   :  { %v62_v13 = vsub.f32 %v42_v2, %v50_v11  ;;  %v52_v14 = vsub.f32 %v40_v3, %v46_v12  ;;  %94 = vpow2.f32 %v53_v9  ;;  %v72_v31 = vadd.f32 %v50_v11, %v46_v12 }
  0xab   :  { %96 = vpow2.f32 %v63_v10 }
  0xac   :  { %v55_v15 = vmul.f32 1.442695, %v52_v14  ;;  %v65_v16 = vmul.f32 1.442695, %v62_v13 }
  0xae   :  { %98 = vpow2.f32 %v55_v15 }
  0xaf   :  { %100 = vpow2.f32 %v65_v16 }
  0xb7   :  { %v95_v17 = vpop.eup %94 }
  0xb8   :  { %57 = vadd.xlane.f32.xlu0 %v95_v17  ;;  %v97_v18 = vpop.eup %96 }
  0xbb   :  { %v99_v19 = vpop.eup %98 }
  0xbc   :  { %67 = vadd.xlane.f32.xlu0 %v97_v18  ;;  %59 = vadd.xlane.f32.xlu1 %v99_v19  ;;  %v101_v20 = vpop.eup %100 }
  0xc0   :  { %69 = vadd.xlane.f32.xlu1 %v101_v20 }
 0x141   :  { %v58_v21 = vpop.xlane.xlu0 %57 }
 0x145   :  { %v60_v22 = vpop.xlane.xlu1 %59  ;;  %v68_v23 = vpop.xlane.xlu0 %67 }
 0x146   :  { %v73_v24 = vmul.f32 %v68_v23, %v58_v21 }
 0x148   :  { %102 = vlog2.f32 %v73_v24 }
 0x149   :  { %v70_v25 = vpop.xlane.xlu1 %69 }
 0x14a   :  { %v74_v26 = vmul.f32 %v70_v25, %v60_v22 }
 0x14c   :  { %104 = vlog2.f32 %v74_v26 }
 0x155   :  { %v103_v27 = vpop.eup %102 }
 0x156   :  { %v76_v28 = vmul.f32 0.6931472, %v103_v27 }
 0x158   :  { %v79_v29 = vadd.f32 %v76_v28, %v71_v8 }
 0x159   :  { %v105_v30 = vpop.eup %104 }
 0x15a   :  { %82 = vst.msk [vmem:[%s183_s2] sm:$0xff] %vm81_vm0, %v79_v29  ;;  %v78_v32 = vmul.f32 0.6931472, %v105_v30 }
 0x15c   :  { %v80_v33 = vadd.f32 %v78_v32, %v72_v31 }
 0x15e   :  { %83 = vst.msk [vmem:[%s183_s2 + $0x8] sm:$0xff] %vm81_vm0, %v80_v33 }
 0x15f   :  { %88 = vsyncpa [#allocation3], 1 }
 0x160   :  { %89 = vsyncpa [#allocation5], 1 }

</bundles_post_ra>
